<compile_context>
chip_gen: v6e
topology: v6e:2x2x1
jax: 0.10.0
libtpu: 0.0.40
codegen_flags: <defaults>
</compile_context>

<pallas_src>
import functools

import jax
import jax.numpy as jnp
from jax import lax
from jax.experimental import pallas as pl
from jax.experimental.pallas import tpu as pltpu

_LANE = 128
_C_SLAB = 8  # channels per streaming slab in the kernel (bounds f32 temporaries)


def _rmsnorm_kernel(x_ref, o_ref, *, eps: float, inv_c: float):
    """Block shape (Nb, C, S, 128); channel reduction is over axis=1.

    Streaming accumulation: only one <=_C_SLAB-channel f32 slab plus a thin
    (Nb, S, 128) f32 accumulator is live at a time (no full-block f32 temp).
    """
    nb, C, S, L = x_ref.shape
    acc = jnp.zeros((nb, S, L), jnp.float32)
    for c0 in range(0, C, _C_SLAB):
        cs = min(_C_SLAB, C - c0)
        xc = x_ref[:, c0:c0 + cs, :, :].astype(jnp.float32)
        acc = acc + jnp.sum(xc * xc, axis=1)          # VPU adds (leading axis)
    # mean-of-squares = acc * (1/C); rsqrt goes to the EUP (free-ish slot).
    scale = lax.rsqrt(acc * inv_c + eps)               # (Nb, S, 128) f32
    scale = scale[:, None, :, :]                       # broadcast over channels
    for c0 in range(0, C, _C_SLAB):
        cs = min(_C_SLAB, C - c0)
        xc = x_ref[:, c0:c0 + cs, :, :].astype(jnp.float32)
        # Multiply in f32, single cast at the end (matches the reference).
        o_ref[:, c0:c0 + cs, :, :] = (xc * scale).astype(o_ref.dtype)


def _largest_divisor_leq(n: int, cap: int) -> int:
    cap = max(1, min(n, cap))
    for d in range(cap, 0, -1):
        if n % d == 0:
            return d
    return 1


def _vmem_budgets(itemsize: int):
    """Pick block-size target / scoped-VMEM limit / dual-TC flag per chip gen."""
    vmem_cap = 64 * 1024 * 1024  # conservative default (v7x-class) if query fails
    try:
        vmem_cap = int(pltpu.get_tpu_info().vmem_capacity_bytes)
    except Exception:
        pass
    if vmem_cap >= 96 * 1024 * 1024:
        # v5e / v6e class: 128 MiB VMEM, single TensorCore per chip.
        return 16 * 1024 * 1024, 96 * 1024 * 1024, False
    # v7x class: 64 MiB VMEM per TC, 2 TCs per chip.
    block_target = 8 * 1024 * 1024 if itemsize >= 4 else 4 * 1024 * 1024
    vmem_limit = min(48 * 1024 * 1024, (vmem_cap * 3) // 4)
    return block_target, vmem_limit, True


def _choose_tiling(N, C, G, itemsize, block_target, dual_tc):
    """Pick (Nb, S) for blocks of shape (Nb, C, S, 128)."""
    per_sample = C * G * _LANE * itemsize
    if per_sample <= block_target:
        S = G
        Nb = _largest_divisor_leq(N, max(1, block_target // per_sample))
    else:
        Nb = 1
        if G % 8 == 0:
            s_cap = max(8, block_target // (C * _LANE * itemsize))
            S = max(8, (min(G, s_cap) // 8) * 8)
            while S > 8 and G % S != 0:
                S -= 8
            if G % S != 0:
                S = G
        else:
            # Second-to-last block dim must be a multiple of 8 or the full dim.
            S = G
    if dual_tc and (N // Nb) * (G // S) < 2:
        # Expose work for both v7x TensorCores on the "parallel" axes.
        if N >= 2:
            Nb = _largest_divisor_leq(N, N // 2)
        elif G % 8 == 0 and G >= 16:
            S2 = max(8, (min(S, G // 2) // 8) * 8)
            while S2 > 8 and G % S2 != 0:
                S2 -= 8
            if G % S2 == 0 and S2 < G:
                S = S2
    return Nb, S


def rmsnorm(x: jax.Array, eps: float = 1e-05) -> jax.Array:
    """RMSNorm over the channel axis (axis=1) of an (N, C, *spatial) tensor."""
    orig_shape = x.shape
    N, C = orig_shape[0], orig_shape[1]
    HW = 1
    for s in orig_shape[2:]:
        HW *= s
    itemsize = jnp.dtype(x.dtype).itemsize

    block_target, vmem_limit, dual_tc = _vmem_budgets(itemsize)

    # Lane-dense layout: flatten spatial dims, pad to a multiple of 128 if
    # needed, and view as (N, C, G, 128).  The channel reduction is over C only,
    # so padded spatial positions are independent and sliced off afterwards.
    HW_pad = ((HW + _LANE - 1) // _LANE) * _LANE
    xr = x.reshape(N, C, HW)
    if HW_pad != HW:
        xr = jnp.pad(xr, ((0, 0), (0, 0), (0, HW_pad - HW)))
    G = HW_pad // _LANE
    xr = xr.reshape(N, C, G, _LANE)

    Nb, S = _choose_tiling(N, C, G, itemsize, block_target, dual_tc)
    grid = (N // Nb, G // S)
    block = (Nb, C, S, _LANE)
    index_map = lambda n, g: (n, 0, g, 0)

    kernel = functools.partial(_rmsnorm_kernel, eps=eps, inv_c=1.0 / C)
    cost = pl.CostEstimate(
        flops=3 * N * C * HW_pad,
        transcendentals=N * HW_pad,
        bytes_accessed=2 * N * C * HW_pad * itemsize,
    )

    out = pl.pallas_call(
        kernel,
        out_shape=jax.ShapeDtypeStruct(xr.shape, x.dtype),
        grid_spec=pltpu.PrefetchScalarGridSpec(
            num_scalar_prefetch=0,
            grid=grid,
            in_specs=[pl.BlockSpec(block, index_map)],
            out_specs=pl.BlockSpec(block, index_map),
        ),
        compiler_params=pltpu.CompilerParams(
            dimension_semantics=("parallel", "parallel"),
            vmem_limit_bytes=vmem_limit,
        ),
        cost_estimate=cost,
    )(xr)

    out = out.reshape(N, C, HW_pad)
    if HW_pad != HW:
        out = out[:, :, :HW]
    return out.reshape(orig_shape)


def rmsnorm_ref(x: jax.Array, eps: float = 1e-05) -> jax.Array:
    """Pure-JAX reference matching the PyTorch forward (reduce over axis=1)."""
    xf = x.astype(jnp.float32)
    ms = jnp.mean(xf * xf, axis=1, keepdims=True)
    return (xf * lax.rsqrt(ms + eps)).astype(x.dtype)


if __name__ == "__main__":
    key = jax.random.PRNGKey(0)
    # d = (C, H, W) = (4, 16, 16); input is NCHW with batch=2.
    x = jax.random.normal(key, (2, 4, 16, 16), dtype=jnp.float32)
    out = jax.block_until_ready(rmsnorm(x))
    ref = rmsnorm_ref(x)
    assert out.shape == x.shape and out.dtype == x.dtype
    assert jnp.allclose(out, ref, atol=1e-5, rtol=1e-5), "mismatch vs reference"

    # Exercise the padded (HW % 128 != 0) path.
    x2 = jax.random.normal(jax.random.PRNGKey(1), (2, 4, 5, 7), dtype=jnp.float32)
    out2 = jax.block_until_ready(rmsnorm(x2))
    assert jnp.allclose(out2, rmsnorm_ref(x2), atol=1e-5, rtol=1e-5), "pad path mismatch"

    # Exercise a bf16 input (f32 accumulation, single cast at the end).
    x3 = jax.random.normal(jax.random.PRNGKey(2), (2, 4, 16, 16)).astype(jnp.bfloat16)
    out3 = jax.block_until_ready(rmsnorm(x3))
    assert jnp.allclose(out3.astype(jnp.float32), rmsnorm_ref(x3).astype(jnp.float32),
                        atol=2e-2, rtol=2e-2), "bf16 path mismatch"

    print("KERNEL_OK")
</pallas_src>

<mosaic_0001>
module attributes {stable_mosaic.version = 11 : i64} {
  func.func @_rmsnorm_kernel(%arg0: i32, %arg1: i32, %arg2: memref<1x4x2x128xf32, #tpu.memory_space<vmem>>, %arg3: memref<1x4x2x128xf32, #tpu.memory_space<vmem>>) attributes {dimension_semantics = [#tpu.dimension_semantics<parallel>, #tpu.dimension_semantics<parallel>], iteration_bounds = array<i64: 2, 1>, scalar_prefetch = 0 : i64, scratch_operands = 0 : i64, tpu.core_type = #tpu.core_type<tc>, window_params = [{transform_indices = @transform_0, window_bounds = array<i64: 1, 4, 2, 128>}, {transform_indices = @transform_1, window_bounds = array<i64: 1, 4, 2, 128>}]} {
    %cst = arith.constant 0.000000e+00 : f32
    %0 = vector.broadcast %cst : f32 to vector<1x2x128xf32>
    %c0 = arith.constant 0 : index
    %c0_0 = arith.constant 0 : index
    %c0_1 = arith.constant 0 : index
    %c0_2 = arith.constant 0 : index
    %1 = vector.load %arg2[%c0, %c0_0, %c0_1, %c0_2] : memref<1x4x2x128xf32, #tpu.memory_space<vmem>>, vector<1x4x2x128xf32>
    %2 = arith.mulf %1, %1 : vector<1x4x2x128xf32>
    %cst_3 = arith.constant dense<0.000000e+00> : vector<1x2x128xf32>
    %3 = vector.multi_reduction <add>, %2, %cst_3 [1] : vector<1x4x2x128xf32> to vector<1x2x128xf32>
    %4 = arith.addf %0, %3 : vector<1x2x128xf32>
    %cst_4 = arith.constant 2.500000e-01 : f32
    %5 = vector.broadcast %cst_4 : f32 to vector<1x2x128xf32>
    %6 = arith.mulf %4, %5 : vector<1x2x128xf32>
    %cst_5 = arith.constant 9.99999974E-6 : f32
    %7 = vector.broadcast %cst_5 : f32 to vector<1x2x128xf32>
    %8 = arith.addf %6, %7 : vector<1x2x128xf32>
    %9 = math.rsqrt %8 : vector<1x2x128xf32>
    %10 = vector.shape_cast %9 : vector<1x2x128xf32> to vector<1x1x2x128xf32>
    %c0_6 = arith.constant 0 : index
    %c0_7 = arith.constant 0 : index
    %c0_8 = arith.constant 0 : index
    %c0_9 = arith.constant 0 : index
    %11 = vector.load %arg2[%c0_6, %c0_7, %c0_8, %c0_9] : memref<1x4x2x128xf32, #tpu.memory_space<vmem>>, vector<1x4x2x128xf32>
    %12 = vector.broadcast %10 : vector<1x1x2x128xf32> to vector<1x4x2x128xf32>
    %13 = arith.mulf %11, %12 : vector<1x4x2x128xf32>
    %c0_10 = arith.constant 0 : index
    %c0_11 = arith.constant 0 : index
    %c0_12 = arith.constant 0 : index
    %c0_13 = arith.constant 0 : index
    %14 = vector.load %arg3[%c0_10, %c0_11, %c0_12, %c0_13] : memref<1x4x2x128xf32, #tpu.memory_space<vmem>>, vector<1x4x2x128xf32>
    tpu.vector_store %arg3[%c0_10, %c0_11, %c0_12, %c0_13], %13 {strides = array<i32>} : memref<1x4x2x128xf32, #tpu.memory_space<vmem>>, vector<1x4x2x128xf32>,
    return
  }
  func.func @transform_0(%arg0: i32, %arg1: i32) -> (i32, i32, i32, i32) {
    %c0_i32 = arith.constant 0 : i32
    %c0_i32_0 = arith.constant 0 : i32
    %c0_i32_1 = arith.constant 0 : i32
    return %arg0, %c0_i32, %arg1, %c0_i32_0 : i32, i32, i32, i32
  }
  func.func @transform_1(%arg0: i32, %arg1: i32) -> (i32, i32, i32, i32) {
    %c0_i32 = arith.constant 0 : i32
    %c0_i32_0 = arith.constant 0 : i32
    %c0_i32_1 = arith.constant 0 : i32
    return %arg0, %c0_i32, %arg1, %c0_i32_0 : i32, i32, i32, i32
  }
}

</mosaic_0001>

<bundles_post_ra>
// kernel: tpu_custom_call.1
= control target key start
LH: loop header
LB: loop body
LE: loop exit
PB: predicated region body
PF: predicated region fallthrough
CT: control target
= control target key end

     0   :  { %6 = vsyncpa [#allocation3], 0  ;;  %s637_s0 = inlined_call_operand.hbm [shape: f32[2,4,2,128], index: 0, kind: input, shape index: {}]   ;;  %s638_s1 = inlined_call_operand.hbm [shape: f32[2,4,2,128], index: 1, kind: output, shape index: {}]  }
   0x1   :  { %8 = vsyncpa [#allocation3 + $0x1], 0 }
   0x2   :  { %9 = vsyncpa [#allocation4], 0 }
   0x3   :  { %11 = vsyncpa [#allocation4 + $0x1], 0  ;;  %s491_s6 = smov 0   ;;  %s493_s7 = smov 0  }
   0x4   :  { %s495_s8 = smov 0   ;;  %s497_s9 = smov 0  }
   0x5   :  { %s499_s10 = smov 0   ;;  %s501_s11 = smov 0  }
   0x6 LB: > { %s280_s12 = sadd.s32 4294967295, %s473_s11   ;;  %s281_s13 = sadd.s32 4294967294, %s473_s11   ;;  %s473_s11 = sphi %s501_s11, %s17_s11   ;;  %s469_s10 = sphi %s499_s10, %s649_s10   ;;  %s465_s9 = sphi %s497_s9, %s648_s9   ;;  %s461_s8 = sphi %s495_s8, %s647_s8   ;;  %s457_s7 = sphi %s493_s7, %s646_s7   ;;  %s453_s6 = sphi %s491_s6, %s645_s6  }
   0x7   : > { %s29_s14 = sadd.s32 1, %s469_s10  ;;  %s38_s15 = sadd.s32 1, %s461_s8 }
   0x8   : > { %p31_p0 = scmp.ge.s32.totalorder %s29_s14, 2  ;;  %p45_p1 = scmp.ne.s32.totalorder %s461_s8, %s457_s7 }
   0x9   : > { %p46_p2 = scmp.eq.s32.totalorder %s473_s11, 0  ;;  %p51_p3 = scmp.ne.s32.totalorder %s457_s7, %s453_s6 }
   0xa   : > { %s651_s14 = smov (%p31_p0, %s29_s14), 0  ;;  %p52_p5 = scmp.eq.s32.totalorder %s280_s12, 0 }
   0xb   : > { %p532_p4 = por %p46_p2, %p45_p1  ;;  %s33_s17 = ssub.s32 %s469_s10, %s651_s14 }
   0xc   : > { %p77_p6 = scmp.eq.s32.totalorder %s280_s12, 1  ;;  %p36_p7 = scmp.eq.s32.totalorder %s33_s17, 0 }
   0xd   : > { %p538_p8 = por %p52_p5, %p51_p3  ;;  %p83_p10 = scmp.eq.s32.totalorder %s281_s13, 1 }
   0xe   : > { %p542_p9 = por %p77_p6, %p45_p1  ;;  %p309_p13 = scmp.lt.s32.totalorder %s473_s11, 2 }
   0xf   : > { %s547_s20 = scalar_select %p36_p7, %s461_s8, %s38_s15  }
  0x10   : > { %p549_p11 = por %p83_p10, %p51_p3  ;;  %s103_s22 = sand.u32 1, %s461_s8  }
  0x11   : > { %s284_s23 = sshll.u32 %s103_s22, 3  ;;  %s295_s24 = sshll.u32 %s469_s10, 7 }
  0x12   : > { %s114_s27 = scalar_lea.hbm %s637_s0, %s295_s24  ;;  %s107_s28 = scalar_lea.vmem [#allocation2], %s284_s23 }
  0x13   : > { %s115_s29 = sshll.u32 %s107_s28, 4  ;;  %p562_p0 = pnand %p309_p13, %p532_p4  ;;  %s116_s29 = int_to_ptr.vmem [resolvable:$true] %s115_s29 }
  0x14   : > { %p287_p1 = scmp.ge.s32.totalorder %s473_s11, 1  ;;  %s104_s2 = scalar_lea.sflag [#allocation3], %s103_s22 }
  0x15   : > { %p367_p2 = pneg %p562_p0  ;;  %s378_s3 = scalar_lea.vmem %s116_s29, 128 }
  0x16   : > { %p379_p3 = scmp.ne.s32.totalorder %s116_s29, %s378_s3  ;;  %s475_s4 = smov [#allocation2]  }
  0x17   : > { %s383_s5 = sshll.u32 %s475_s4, 4  ;;  %s384_s5 = int_to_ptr.vmem [resolvable:$false] %s383_s5 }
  0x18   : > { %p381_p5 = pnand %p379_p3, %p367_p2  ;;  %s385_s12 = scalar_lea.vmem %s384_s5, 256 }
  0x19   : > { %p386_p7 = scmp.lt.s32.totalorder %s116_s29, %s384_s5  ;;  %p387_p10 = scmp.lt.s32.totalorder %s385_s12, %s378_s3 }
  0x1a   : > { %p382_p6 = pneg %p381_p5 }
  0x1b   : > { %p388_p12 = por %p387_p10, %p386_p7 }
  0x1d   : > { %p389_p4 = pnand %p388_p12, %p382_p6 }
  0x1f   : > { %392 = shalt.err (!%p389_p4)
}
  0x20   : > { %s476_s13 = smov 32   ;;  %s477_s15 = smov 2  }
  0x21   : > { %304 = dma.hbm_to_vmem [thread:$0]  (!%p562_p0), %s114_s27, 128, %s116_s29, %s104_s2, %s476_s13, %s476_s13, %s477_s15  }
  0x22   : > { %p123_p13 = scmp.lt.s32.totalorder %s473_s11, 3 }
  0x24   : > { %p124_p2 = pnand %p287_p1, %p123_p13 }
  0x25   : > { %s575_s16 = sand.u32 (!%p124_p2), 1, %s457_s7  }
  0x26   : > { %127 = sbr.rel (%p124_p2) target bundleno = 89 (0x59), region = 24  ;;  %s288_s17 = sshll.u32 (!%p124_p2), %s575_s16, 3 }
  0x27   : > { %s130_s22 = scalar_lea.sflag (!%p124_p2), [#allocation3], %s575_s16  ;;  %s133_s23 = scalar_lea.vmem (!%p124_p2), [#allocation2], %s288_s17 }
  0x2b   : > { %444 = dma.done.wait (%p538_p8), %s130_s22, 128  }
  0x2c   : > { %446 = vsyncadd (%p538_p8), %s130_s22, 4294967168  ;;  %vm160_vm0 = vcmask 1041408   ;;  %v152_v0 = vld [vmem:[%s133_s23] sm:$0x3]  ;;  %v153_v1 = vld [vmem:[%s133_s23 + $0x2] sm:$0x3] }
  0x2d   : > { %v154_v2 = vld [vmem:[%s133_s23 + $0x4] sm:$0x3]  ;;  %v155_v3 = vld [vmem:[%s133_s23 + $0x6] sm:$0x3]  ;;  %v156_v4 = vmul.f32 %v152_v0, %v152_v0  ;;  %v157_v5 = vmul.f32 %v153_v1, %v153_v1  ;;  %s151_s18 = scalar_lea.vmem [#allocation5], %s288_s17  ;;  %s296_s25 = sshll.u32 %s465_s9, 7 }
  0x2e   : > { %v158_v6 = vmul.f32 %v154_v2, %v154_v2  ;;  %v159_v7 = vmul.f32 %v155_v3, %v155_v3  ;;  %s195_s24 = sshll.u32 %s151_s18, 4  ;;  %s589_s28 = scalar_lea.hbm %s638_s1, %s296_s25  ;;  %s584_s24 = int_to_ptr.vmem [resolvable:$true] %s195_s24 }
  0x2f   : > { %v161_v8 = vsel %vm160_vm0, %v156_v4, 0.0  ;;  %v162_v9 = vsel %vm160_vm0, %v157_v5, 0.0  ;;  %s181_s9 = scalar_lea.sflag [#allocation4], %s575_s16  ;;  %s393_s29 = scalar_lea.vmem %s584_s24, 128 }
  0x30   : > { %v164_v10 = vsel %vm160_vm0, %v158_v6, 0.0  ;;  %v163_v11 = vadd.f32 %v162_v9, %v161_v8  ;;  %v166_v12 = vsel %vm160_vm0, %v159_v7, 0.0  ;;  %p394_p8 = scmp.ne.s32.totalorder %s584_s24, %s393_s29  ;;  %s478_s30 = smov [#allocation5]  }
  0x31   : > { %s397_s2 = sshll.u32 %s478_s30, 4  ;;  %s398_s2 = int_to_ptr.vmem [resolvable:$false] %s397_s2 }
  0x32   : > { %v165_v13 = vadd.f32 %v164_v10, %v163_v11  ;;  %p395_p12 = pnand %p394_p8, %p542_p9  ;;  %s399_s3 = scalar_lea.vmem %s398_s2, 256 }
  0x33   : > { %p400_p1 = scmp.lt.s32.totalorder %s584_s24, %s398_s2  ;;  %p401_p3 = scmp.lt.s32.totalorder %s399_s3, %s393_s29 }
  0x34   : > { %v167_v14 = vadd.f32 %v166_v12, %v165_v13  ;;  %p396_p0 = pneg %p395_p12 }
  0x35   : > { %p402_p5 = por %p401_p3, %p400_p1 }
  0x36   : > { %v169_v15 = vmul.f32 0.25, %v167_v14 }
  0x37   : > { %p403_p6 = pnand %p402_p5, %p396_p0 }
  0x38   : > { %v170_v16 = vadd.f32 1e-05, %v169_v15 }
  0x3a   : > { %363 = vrsqrt.f32 %v170_v16 }
  0x47   : > { %v364_v17 = vpop.eup %363 }
  0x48   : > { %v172_v18 = vmul.f32 %v364_v17, %v152_v0  ;;  %v173_v19 = vmul.f32 %v364_v17, %v153_v1  ;;  %v174_v20 = vmul.f32 %v364_v17, %v154_v2  ;;  %v175_v21 = vmul.f32 %v364_v17, %v155_v3 }
  0x4a   : > { %176 = vst [vmem:[%s151_s18] sm:$0x3] %v172_v18  ;;  %177 = vst [vmem:[%s151_s18 + $0x2] sm:$0x3] %v173_v19 }
  0x4b   : > { %178 = vst [vmem:[%s151_s18 + $0x4] sm:$0x3] %v174_v20  ;;  %179 = vst [vmem:[%s151_s18 + $0x6] sm:$0x3] %v175_v21 }
  0x4c   : > { %406 = shalt.err (!%p403_p6)
}
  0x4d   : > { %s407_s4 = scalar_lea.hbm %s589_s28, 128  ;;  %s411_s13 = scalar_lea.hbm %s638_s1, 256 }
  0x4e   : > { %p408_p7 = scmp.ne.s32.totalorder %s589_s28, %s407_s4  ;;  %p412_p13 = scmp.lt.s32.totalorder %s589_s28, %s638_s1 }
  0x4f   : > { %p413_p2 = scmp.lt.s32.totalorder %s411_s13, %s407_s4 }
  0x50   : > { %p409_p10 = pnand %p408_p7, %p542_p9 }
  0x51   : > { %p414_p8 = por %p413_p2, %p412_p13 }
  0x52   : > { %p410_p4 = pneg %p409_p10 }
  0x54   : > { %p415_p12 = pnand %p414_p8, %p410_p4 }
  0x56   : > { %418 = shalt.err (!%p415_p12)
}
  0x57   : > { %s479_s22 = smov 32   ;;  %s480_s23 = smov 2  }
  0x58   : > { %299 = dma.vmem_to_hbm [thread:$0]  (%p542_p9), %s584_s24, 128, %s589_s28, %s181_s9, %s479_s22, %s479_s22, %s480_s23  }
  0x59 PF: > { %s210_s18 = sand.u32 1, %s453_s6   ;;  %p644_p0 = scmp.ge.s32.totalorder %s473_s11, 2 }
  0x5a   : > { %s211_s25 = scalar_lea.sflag [#allocation4], %s210_s18 }
  0x5b   : > { %p306_p1 = pnand %p644_p0, %p549_p11 }
  0x5d   : > { %p307_p3 = pneg %p306_p1 }
  0x5f   : > { %448 = dma.done.wait (%p307_p3), %s211_s25, 128  }
  0x60   : > { %450 = vsyncadd (%p307_p3), %s211_s25, 4294967168  ;;  %s17_s11 = sadd.s32 1, %s473_s11   ;;  %s645_s6 = smov %s457_s7 }
  0x61   : > { %p14_p5 = scmp.ge.s32.totalorder %s17_s11, 4   ;;  %s646_s7 = smov %s461_s8 }
  0x62   : > { %s647_s8 = smov %s547_s20  ;;  %s648_s9 = smov %s469_s10 }
  0x63   : > { %s649_s10 = smov %s651_s14  ;;  %16 = sbr.rel (!%p14_p5) target bundleno = 6 (0x6), region = 69 }
  0x68   :  { %216 = vsyncpa [#allocation3], 1 }
  0x69   :  { %218 = vsyncpa [#allocation3 + $0x1], 1 }
  0x6a   :  { %219 = vsyncpa [#allocation4], 1 }
  0x6b   :  { %221 = vsyncpa [#allocation4 + $0x1], 1 }

</bundles_post_ra>
